<compile_context>
chip_gen: v5e
topology: v5e:2x2
jax: 0.10.0
libtpu: 0.0.40
codegen_flags: <defaults>
</compile_context>

<pallas_src>
import jax
import jax.numpy as jnp
from jax.experimental import pallas as pl
from jax.experimental.pallas import tpu as pltpu


def _round_up(a: int, b: int) -> int:
    return pl.cdiv(a, b) * b


def _channel_mean_kernel(x_ref, o_ref):
    # x_ref: (nb, C, t_hw) block in VMEM; o_ref: (nb, t_hw).
    # Upcast to f32 only inside the kernel; I/O stays in the input dtype.
    x = x_ref[...].astype(jnp.float32)
    inv_c = 1.0 / x.shape[1]                 # block always spans the full C axis
    o_ref[...] = (jnp.sum(x, axis=1) * inv_c).astype(o_ref.dtype)


def channel_wise_mean(x: jax.Array) -> jax.Array:
    """Equivalent of torch `x.mean([1])` for a 4-D NCHW array."""
    n, c, h, w = x.shape
    hw = h * w
    lane = 128
    itemsize = jnp.dtype(x.dtype).itemsize
    # Sublane packing of the second-to-last block dim: 8 (f32), 16 (bf16), 32 (i8/fp8).
    sublane = (8 * 4) // itemsize

    # 8 batch rows per block -> full (8,128) output tiles; the last batch block is
    # masked when N % 8 != 0. For N < 8 the block equals the full batch extent.
    nb = min(n, 8)

    # Sublane-aware bytes per lane of tile width, counting 2x input + 2x output buffers.
    c_pad = _round_up(c, sublane)        # input block (nb, C, t_hw): C sits on sublanes
    nb_pad = _round_up(nb, sublane)      # output block (nb, t_hw): nb sits on sublanes
    bytes_per_lane = 2 * (nb * c_pad + nb_pad) * itemsize

    # Keep all pipeline buffers within ~36 MiB and raise the scoped-VMEM limit to 48 MiB.
    vmem_limit_bytes = 48 * 1024 * 1024
    pipeline_budget_bytes = 36 * 1024 * 1024
    t_hw = max(lane, (pipeline_budget_bytes // bytes_per_lane) // lane * lane)
    t_hw = min(t_hw, _round_up(hw, lane))
    # TODO(synk): for very large C (input block over budget even at t_hw=128), add an
    # innermost "arbitrary" C grid axis with an f32 VMEM accumulator (inv_c from full C).

    grid_n = pl.cdiv(n, nb)
    grid_hw = pl.cdiv(hw, t_hw)
    # v7x has 2 TensorCores: ensure the "parallel" axes expose >= 2 grid steps when the
    # spatial extent is large enough to split (neutral on single-TC v5e/v6e).
    if grid_n * grid_hw < 2 and hw > lane:
        t_hw = max(lane, _round_up(pl.cdiv(hw, 2), lane))
        grid_hw = pl.cdiv(hw, t_hw)

    # Flatten spatial dims so H*W is the fast lane axis (free, contiguous). No padding.
    x2 = x.reshape(n, c, hw)

    out = pl.pallas_call(
        _channel_mean_kernel,
        out_shape=jax.ShapeDtypeStruct((n, hw), x.dtype),
        grid_spec=pltpu.PrefetchScalarGridSpec(
            num_scalar_prefetch=0,
            grid=(grid_n, grid_hw),
            in_specs=[
                # (nb, C, t_hw): last-two block dims are (C = full dim, 128-multiple).
                pl.BlockSpec((nb, c, t_hw), lambda i, j: (i, 0, j)),
            ],
            # (nb, t_hw): sublane- and lane-dense output block -> unmasked stores
            # everywhere except the (automatically masked) boundary blocks.
            out_specs=pl.BlockSpec((nb, t_hw), lambda i, j: (i, j)),
        ),
        compiler_params=pltpu.CompilerParams(
            dimension_semantics=("parallel", "parallel"),
            vmem_limit_bytes=vmem_limit_bytes,
        ),
    )(x2)

    return out.reshape(n, h, w)


if __name__ == "__main__":
    key = jax.random.PRNGKey(0)

    # Primary case: N=2, C=4, 16x16, f32 (small shapes consistent with the module).
    x = jax.random.normal(key, (2, 4, 16, 16), dtype=jnp.float32)
    out = jax.block_until_ready(channel_wise_mean(x))
    ref = jnp.mean(x, axis=1)
    assert out.shape == ref.shape == (2, 16, 16)
    assert jnp.allclose(out, ref, atol=1e-6, rtol=1e-6)

    # Extra coverage per the review: N%8==0, HW%128!=0, N>8 (masked batch block), bf16.
    for shape, dtype, tol in [
        ((8, 3, 10, 15), jnp.float32, 1e-6),    # nb=8 path, hw=150 (not 128-mult), C=3
        ((9, 4, 6, 7), jnp.float32, 1e-6),      # masked last batch block, hw=42 < 128
        ((3, 5, 11, 13), jnp.bfloat16, 1e-2),   # bf16 path, N<8, hw=143
    ]:
        key, sub = jax.random.split(key)
        xt = jax.random.normal(sub, shape, dtype=dtype)
        o = jax.block_until_ready(channel_wise_mean(xt))
        r = jnp.mean(xt.astype(jnp.float32), axis=1).astype(dtype)
        assert o.shape == r.shape
        assert jnp.allclose(o.astype(jnp.float32), r.astype(jnp.float32),
                            atol=tol, rtol=tol)

    print("KERNEL_OK")
</pallas_src>

<mosaic_0001>
module attributes {stable_mosaic.version = 11 : i64} {
  func.func @_channel_mean_kernel(%arg0: i32, %arg1: i32, %arg2: memref<2x4x128xf32, #tpu.memory_space<vmem>>, %arg3: memref<2x128xf32, #tpu.memory_space<vmem>>) attributes {dimension_semantics = [#tpu.dimension_semantics<parallel>, #tpu.dimension_semantics<parallel>], iteration_bounds = array<i64: 1, 2>, scalar_prefetch = 0 : i64, scratch_operands = 0 : i64, tpu.core_type = #tpu.core_type<tc>, window_params = [{transform_indices = @transform_0, window_bounds = array<i64: 2, 4, 128>}, {transform_indices = @transform_1, window_bounds = array<i64: 2, 128>}]} {
    %c0 = arith.constant 0 : index
    %c0_0 = arith.constant 0 : index
    %c0_1 = arith.constant 0 : index
    %0 = vector.load %arg2[%c0, %c0_0, %c0_1] : memref<2x4x128xf32, #tpu.memory_space<vmem>>, vector<2x4x128xf32>
    %cst = arith.constant dense<0.000000e+00> : vector<2x128xf32>
    %1 = vector.multi_reduction <add>, %0, %cst [1] : vector<2x4x128xf32> to vector<2x128xf32>
    %cst_2 = arith.constant 2.500000e-01 : f32
    %2 = vector.broadcast %cst_2 : f32 to vector<2x128xf32>
    %3 = arith.mulf %1, %2 : vector<2x128xf32>
    %c0_3 = arith.constant 0 : index
    %c0_4 = arith.constant 0 : index
    %4 = vector.load %arg3[%c0_3, %c0_4] : memref<2x128xf32, #tpu.memory_space<vmem>>, vector<2x128xf32>
    tpu.vector_store %arg3[%c0_3, %c0_4], %3 {strides = array<i32>} : memref<2x128xf32, #tpu.memory_space<vmem>>, vector<2x128xf32>,
    return
  }
  func.func @transform_0(%arg0: i32, %arg1: i32) -> (i32, i32, i32) {
    %c0_i32 = arith.constant 0 : i32
    %c0_i32_0 = arith.constant 0 : i32
    return %arg0, %c0_i32, %arg1 : i32, i32, i32
  }
  func.func @transform_1(%arg0: i32, %arg1: i32) -> (i32, i32) {
    %c0_i32 = arith.constant 0 : i32
    return %arg0, %arg1 : i32, i32
  }
}

</mosaic_0001>

<bundles_post_ra>
// kernel: tpu_custom_call.1
= control target key start
LH: loop header
LB: loop body
LE: loop exit
PB: predicated region body
PF: predicated region fallthrough
CT: control target
= control target key end

     0   :  { %6 = vsyncpa [#allocation3], 0  ;;  %s607_s0 = inlined_call_operand.hbm [shape: f32[2,4,256], index: 0, kind: input, shape index: {}]   ;;  %s608_s1 = inlined_call_operand.hbm [shape: f32[2,256], index: 1, kind: output, shape index: {}]  }
   0x1   :  { %8 = vsyncpa [#allocation3 + $0x1], 0 }
   0x2   :  { %9 = vsyncpa [#allocation4], 0 }
   0x3   :  { %11 = vsyncpa [#allocation4 + $0x1], 0  ;;  %s486_s6 = smov 0   ;;  %s488_s7 = smov 0  }
   0x4   :  { %s490_s8 = smov 0   ;;  %s492_s9 = smov 0  }
   0x5   :  { %s494_s10 = smov 0   ;;  %s496_s11 = smov 0  }
   0x6 LB: > { %s281_s12 = sadd.s32 4294967295, %s471_s11   ;;  %s282_s13 = sadd.s32 4294967294, %s471_s11   ;;  %s471_s11 = sphi %s496_s11, %s17_s11   ;;  %s467_s10 = sphi %s494_s10, %s617_s10   ;;  %s463_s9 = sphi %s492_s9, %s616_s9   ;;  %s459_s8 = sphi %s490_s8, %s615_s8   ;;  %s455_s7 = sphi %s488_s7, %s614_s7   ;;  %s451_s6 = sphi %s486_s6, %s613_s6  }
   0x7   : > { %s26_s14 = sadd.s32 1, %s467_s10  ;;  %s38_s15 = sadd.s32 1, %s459_s8 }
   0x8   : > { %p27_p0 = scmp.ge.s32.totalorder %s26_s14, 2  ;;  %p45_p1 = scmp.ne.s32.totalorder %s459_s8, %s455_s7 }
   0x9   : > { %p46_p2 = scmp.eq.s32.totalorder %s471_s11, 0  ;;  %p51_p3 = scmp.ne.s32.totalorder %s455_s7, %s451_s6 }
   0xa   : > { %s619_s14 = smov (%p27_p0, %s26_s14), 0  ;;  %p52_p5 = scmp.eq.s32.totalorder %s281_s12, 0 }
   0xb   : > { %p527_p4 = por %p46_p2, %p45_p1  ;;  %s34_s17 = ssub.s32 %s467_s10, %s619_s14 }
   0xc   : > { %p77_p6 = scmp.eq.s32.totalorder %s281_s12, 1  ;;  %p36_p7 = scmp.eq.s32.totalorder %s34_s17, 0 }
   0xd   : > { %p533_p8 = por %p52_p5, %p51_p3  ;;  %p83_p10 = scmp.eq.s32.totalorder %s282_s13, 1 }
   0xe   : > { %p537_p9 = por %p77_p6, %p45_p1  ;;  %p284_p12 = scmp.ge.s32.totalorder %s471_s11, 2 }
   0xf   : > { %s542_s20 = scalar_select %p36_p7, %s459_s8, %s38_s15  }
  0x10   : > { %p544_p11 = por %p83_p10, %p51_p3  ;;  %p306_p13 = scmp.lt.s32.totalorder %s471_s11, 2 }
  0x11   : > { %s103_s22 = sand.u32 1, %s459_s8   ;;  %s286_s24 = sshll.u32 %s467_s10, 2 }
  0x12   : > { %s285_s23 = sshll.u32 %s103_s22, 3  ;;  %s114_s27 = scalar_lea.hbm %s607_s0, %s286_s24 }
  0x13   : > { %s107_s28 = scalar_lea.vmem [#allocation2], %s285_s23  ;;  %s115_s30 = sshll.u32 %s114_s27, 4  ;;  %s116_s30 = int_to_ptr.hbm [resolvable:$true] %s115_s30 }
  0x14   : > { %s117_s29 = sshll.u32 %s107_s28, 4  ;;  %p299_p0 = pnand %p306_p13, %p527_p4  ;;  %s118_s29 = int_to_ptr.vmem [resolvable:$true] %s117_s29 }
  0x15   : > { %s104_s2 = scalar_lea.sflag [#allocation3], %s103_s22  ;;  %s473_s3 = smov 128  }
  0x16   : > { %s474_s4 = smov 64   ;;  %s475_s5 = smov 4  }
  0x17   : > { %301 = dma.hbm_to_vmem [thread:$0]  (!%p299_p0), %s116_s30, 128, %s118_s29, %s104_s2, %s473_s3, %s474_s4, %s475_s5  }
  0x18   : > { %p287_p1 = scmp.ge.s32.totalorder %s471_s11, 1  ;;  %p125_p2 = scmp.lt.s32.totalorder %s471_s11, 3 }
  0x1a   : > { %p126_p3 = pnand %p287_p1, %p125_p2 }
  0x1b   : > { %s560_s12 = sand.u32 (!%p126_p3), 1, %s455_s7  }
  0x1c   : > { %129 = sbr.rel (%p126_p3) target bundleno = 54 (0x36), region = 24  ;;  %s288_s13 = sshll.u32 (!%p126_p3), %s560_s12, 3 }
  0x1d   : > { %s132_s15 = scalar_lea.sflag (!%p126_p3), [#allocation3], %s560_s12  ;;  %s135_s17 = scalar_lea.vmem (!%p126_p3), [#allocation2], %s288_s13 }
  0x21   : > { %442 = dma.done.wait (%p533_p8), %s132_s15, 128  }
  0x22   : > { %444 = vsyncadd (%p533_p8), %s132_s15, 4294967168  ;;  %vm158_vm0 = vcmask 1043456   ;;  %v156_v0 = vld [vmem:[%s135_s17] sm:$0xf]  ;;  %v157_v1 = vld [vmem:[%s135_s17 + $0x4] sm:$0xf] }
  0x23   : > { %v159_v2 = vsel %vm158_vm0, %v156_v0, 0.0  ;;  %v166_v3 = vsel %vm158_vm0, %v157_v1, 0.0  ;;  %s289_s16 = sshll.u32 %s560_s12, 1  ;;  %s291_s22 = sshll.u32 %s463_s9, 1  ;;  %vm177_vm1 = vcmask 1041409  }
  0x24   : > { %v160_v4 = vrot.slane %v159_v2, 4  ;;  %v167_v5 = vrot.slane %v166_v3, 4  ;;  %s194_s24 = scalar_lea.hbm %s608_s1, %s291_s22  ;;  %s154_s25 = scalar_lea.vmem [#allocation5], %s289_s16 }
  0x25   : > { %s196_s26 = sshll.u32 %s154_s25, 4  ;;  %s198_s27 = sshll.u32 %s194_s24, 4  ;;  %s197_s26 = int_to_ptr.vmem [resolvable:$true] %s196_s26  ;;  %s199_s27 = int_to_ptr.hbm [resolvable:$true] %s198_s27 }
  0x26   : > { %v161_v6 = vadd.f32 %v160_v4, %v159_v2  ;;  %v168_v7 = vadd.f32 %v167_v5, %v166_v3  ;;  %s182_s9 = scalar_lea.sflag [#allocation4], %s560_s12  ;;  %s403_s28 = sshra.s32 %s199_s27, 4  ;;  %s404_s28 = int_to_ptr.hbm [resolvable:$true] %s403_s28 }
  0x27   : > { %s405_s29 = scalar_lea.hbm %s404_s28, 2  ;;  %s409_s3 = scalar_lea.hbm %s608_s1, 4 }
  0x28   : > { %v162_v8 = vrot.slane %v161_v6, 2  ;;  %v169_v9 = vrot.slane %v168_v7, 2  ;;  %p406_p4 = scmp.ne.s32.totalorder %s404_s28, %s405_s29  ;;  %p410_p7 = scmp.lt.s32.totalorder %s404_s28, %s608_s1 }
  0x29   : > { %p411_p8 = scmp.lt.s32.totalorder %s409_s3, %s405_s29 }
  0x2a   : > { %v163_v10 = vadd.f32 %v162_v8, %v161_v6  ;;  %v170_v11 = vadd.f32 %v169_v9, %v168_v7  ;;  %p407_p5 = pnand %p406_p4, %p537_p9 }
  0x2b   : > { %p412_p10 = por %p411_p8, %p410_p7 }
  0x2c   : > { %v164_v12 = vrot.slane %v163_v10, 1  ;;  %v171_v13 = vrot.slane %v170_v11, 1  ;;  %p408_p6 = pneg %p407_p5 }
  0x2e   : > { %v165_v14 = vadd.f32 %v164_v12, %v163_v10  ;;  %v172_v15 = vadd.f32 %v171_v13, %v170_v11  ;;  %p413_p13 = pnand %p412_p10, %p408_p6 }
  0x30   : > { %v173_v16 = vmul.f32 0.25, %v165_v14  ;;  %v174_v17 = vmul.f32 0.25, %v172_v15 }
  0x32   : > { %v178_v18 = vsel %vm177_vm1, %v174_v17, %v173_v16 }
  0x33   : > { %180 = vst [vmem:[%s154_s25] sm:$0x3] %v178_v18 }
  0x34   : > { %416 = shalt.err (!%p413_p13)
}
  0x35   : > { %296 = dma.vmem_to_hbm [thread:$0]  (%p537_p9), %s197_s26, 32, %s199_s27, %s182_s9  }
  0x36 PF: > { %s210_s12 = sand.u32 1, %s451_s6   ;;  %p303_p0 = pnand %p284_p12, %p544_p11 }
  0x37   : > { %s211_s13 = scalar_lea.sflag [#allocation4], %s210_s12 }
  0x38   : > { %p304_p1 = pneg %p303_p0 }
  0x3a   : > { %446 = dma.done.wait (%p304_p1), %s211_s13, 32  }
  0x3b   : > { %448 = vsyncadd (%p304_p1), %s211_s13, 4294967264  ;;  %s17_s11 = sadd.s32 1, %s471_s11   ;;  %s613_s6 = smov %s455_s7 }
  0x3c   : > { %p14_p2 = scmp.ge.s32.totalorder %s17_s11, 4   ;;  %s614_s7 = smov %s459_s8 }
  0x3d   : > { %s615_s8 = smov %s542_s20  ;;  %s616_s9 = smov %s467_s10 }
  0x3e   : > { %s617_s10 = smov %s619_s14  ;;  %16 = sbr.rel (!%p14_p2) target bundleno = 6 (0x6), region = 69 }
  0x43   :  { %217 = vsyncpa [#allocation3], 1 }
  0x44   :  { %219 = vsyncpa [#allocation3 + $0x1], 1 }
  0x45   :  { %220 = vsyncpa [#allocation4], 1 }
  0x46   :  { %222 = vsyncpa [#allocation4 + $0x1], 1 }

</bundles_post_ra>
